<compile_context>
chip_gen: v7x
topology: tpu7x:2x2x1
jax: 0.10.0
libtpu: 0.0.40
codegen_flags: <defaults>
</compile_context>

<pallas_src>
import functools

import jax
import jax.numpy as jnp
from jax.experimental import pallas as pl
from jax.experimental.pallas import tpu as pltpu


def _round_up(x, m):
    return (x + m - 1) // m * m


# ---------------------------------------------------------------------------
# Kernel body
# ---------------------------------------------------------------------------
def _mixnet_kernel(x_ref, w1_ref, b1_ref, wo_ref, bo_ref, o_ref, *,
                   num_agent, n_out):
    # f_v: [TM, D_in] @ [D_in, H_pad], f32 accumulate, bias + relu in f32.
    h = jnp.dot(x_ref[...], w1_ref[...], preferred_element_type=jnp.float32)
    h = jnp.maximum(h + b1_ref[...], 0.0)
    # Fused heads (w_v | b_v): [TM, H_pad] @ [H_pad, 128]; 128-lane-wide
    # compute keeps the MXU result path clean, the store below is thin.
    out = jnp.dot(h.astype(wo_ref.dtype), wo_ref[...],
                  preferred_element_type=jnp.float32)
    out = out + bo_ref[...]
    # |.| applies only to the w_v columns (first num_agent lanes).  Epilogue
    # runs on VPU slack -- not worth "optimizing" (perf review).
    col = jax.lax.broadcasted_iota(jnp.int32, out.shape, 1)
    out = jnp.where(col < num_agent, jnp.abs(out), out)
    # Thin store: only the real n_out = num_agent + 1 columns go to HBM.
    o_ref[...] = out[:, :n_out].astype(o_ref.dtype)


# ---------------------------------------------------------------------------
# One-time weight prep (hoisted out of the hot path)
# ---------------------------------------------------------------------------
def prepare_mixnet_params(params, *, param_dtype=jnp.float32):
    """Fuse + pad MixNet weights once so the per-call path has zero prep ops.

    params: w_fv [d_in, H], b_fv [1, H], w_wv [H, A], b_wv [1, A],
            w_bv [H, 1],  b_bv [1, 1]   (input-major weights).
    """
    d_in, H = params["w_fv"].shape
    n_agents = params["w_wv"].shape[1]
    h_pad = _round_up(H, 128)
    n_out = n_agents + 1                      # w_v columns followed by b_v
    out_pad = _round_up(max(n_out, 128), 128)

    w1 = jnp.pad(params["w_fv"], ((0, 0), (0, h_pad - H))).astype(param_dtype)
    b1 = jnp.pad(params["b_fv"], ((0, 0), (0, h_pad - H))).astype(jnp.float32)
    wo = jnp.concatenate([params["w_wv"], params["w_bv"]], axis=1)   # [H, n_out]
    bo = jnp.concatenate([params["b_wv"], params["b_bv"]], axis=1)   # [1, n_out]
    wo = jnp.pad(wo, ((0, h_pad - H), (0, out_pad - n_out))).astype(param_dtype)
    bo = jnp.pad(bo, ((0, 0), (0, out_pad - n_out))).astype(jnp.float32)

    return dict(w1=w1, b1=b1, wo=wo, bo=bo,
                d_in=d_in, n_agents=n_agents, n_out=n_out,
                h_pad=h_pad, out_pad=out_pad)


# ---------------------------------------------------------------------------
# Batch-tile selection
# ---------------------------------------------------------------------------
def _pick_tm(B, d_in, h_pad, out_pad, *, tm_cap, itemsize=4,
             vmem_budget_bytes=12 * 1024 * 1024):
    """Largest batch tile that (a) fits a conservative scoped-VMEM budget
    (safe for v5e's 16 MiB default, far under v6e/v7x) and (b) keeps >= 2
    grid steps for medium/large B so v7x can shard the parallel batch axis
    across both TensorCores."""
    if B <= 8:
        return B                                   # single full-batch block
    # Per batch row: double-buffered x tile + double-buffered (lane-padded)
    # output tile + f32 intermediates (hidden and fused-head output).
    per_row = (2 * d_in + 2 * out_pad) * itemsize + (h_pad + out_pad) * 4
    vmem_rows = max(8, (vmem_budget_bytes // per_row) // 8 * 8)
    two_step = _round_up(pl.cdiv(B, 2), 8)         # >= 2 grid steps
    return max(8, min(tm_cap, vmem_rows, two_step))


# ---------------------------------------------------------------------------
# Forward
# ---------------------------------------------------------------------------
def mixnet_forward(states, params, *, tm=2048, compute_dtype=jnp.float32):
    """Pallas implementation of MixNet.forward.

    states: [B, num_agent, num_state]
    params: output of prepare_mixnet_params (preferred, prep hoisted out of
            the hot path) or raw params (prep happens here).
    Returns (|w| [B, num_agent, 1], b [B, 1, 1]).
    """
    if "w1" not in params:
        params = prepare_mixnet_params(params, param_dtype=compute_dtype)

    B, n_agents, num_state = states.shape
    d_in = n_agents * num_state
    assert d_in == params["d_in"] and n_agents == params["n_agents"]
    n_out, h_pad, out_pad = params["n_out"], params["h_pad"], params["out_pad"]

    # torch.cat over agents of a [B, A, S] tensor is a row-major reshape ->
    # fuses into the kernel input for free.
    x = states.reshape(B, d_in)
    if x.dtype != compute_dtype:
        # NOTE: a standalone f32->bf16 cast of an f32 HBM input adds a convert
        # round trip; only pass compute_dtype=bf16 when states arrive in bf16.
        x = x.astype(compute_dtype)

    tm_eff = _pick_tm(B, d_in, h_pad, out_pad, tm_cap=tm,
                      itemsize=jnp.dtype(compute_dtype).itemsize)
    # Ragged last block handled by Pallas (edge stores masked); rows are
    # independent so no wrapper-side pad of x is needed.
    grid = (pl.cdiv(B, tm_eff),)

    # Weights are tiny here so default double-buffering of the constant-index
    # specs is fine; for very large H switch them to pipeline_mode=pl.Buffered(1).
    out = pl.pallas_call(
        functools.partial(_mixnet_kernel, num_agent=n_agents, n_out=n_out),
        out_shape=jax.ShapeDtypeStruct((B, n_out), jnp.float32),
        grid=grid,
        in_specs=[
            pl.BlockSpec((tm_eff, d_in), lambda i: (i, 0)),     # batch tile
            pl.BlockSpec((d_in, h_pad), lambda i: (0, 0)),      # resident weights
            pl.BlockSpec((1, h_pad), lambda i: (0, 0)),
            pl.BlockSpec((h_pad, out_pad), lambda i: (0, 0)),
            pl.BlockSpec((1, out_pad), lambda i: (0, 0)),
        ],
        out_specs=pl.BlockSpec((tm_eff, n_out), lambda i: (i, 0)),
        compiler_params=pltpu.CompilerParams(
            dimension_semantics=("parallel",)),
    )(x, params["w1"], params["b1"], params["wo"], params["bo"])

    w = out[:, :n_agents].reshape(B, n_agents, 1)
    b = out[:, n_agents:n_out].reshape(B, 1, 1)
    return w, b


def init_params(key, num_state, num_action, num_agent, num_hidden):
    """nn.Linear default init (U(-1/sqrt(fan_in), +)); num_action unused."""
    del num_action
    d_in = num_state * num_agent
    ks = jax.random.split(key, 6)

    def lin(kw, kb, fan_in, fan_out):
        bound = 1.0 / jnp.sqrt(float(fan_in))
        w = jax.random.uniform(kw, (fan_in, fan_out), jnp.float32, -bound, bound)
        b = jax.random.uniform(kb, (1, fan_out), jnp.float32, -bound, bound)
        return w, b

    w_fv, b_fv = lin(ks[0], ks[1], d_in, num_hidden)
    w_wv, b_wv = lin(ks[2], ks[3], num_hidden, num_agent)
    w_bv, b_bv = lin(ks[4], ks[5], num_hidden, 1)
    return dict(w_fv=w_fv, b_fv=b_fv, w_wv=w_wv, b_wv=b_wv, w_bv=w_bv, b_bv=b_bv)


if __name__ == "__main__":
    num_state, num_action, num_agent, num_hidden = 16, 8, 4, 32

    key = jax.random.PRNGKey(0)
    k_states, k_states2, k_params = jax.random.split(key, 3)

    params = init_params(k_params, num_state, num_action, num_agent, num_hidden)
    prepped = prepare_mixnet_params(params)       # one-time weight prep

    def ref_forward(s):
        bsz = s.shape[0]
        xr = s.reshape(bsz, num_agent * num_state)
        hr = jnp.maximum(xr @ params["w_fv"] + params["b_fv"], 0.0)
        wr = jnp.abs(hr @ params["w_wv"] + params["b_wv"]).reshape(bsz, num_agent, 1)
        br = (hr @ params["w_bv"] + params["b_bv"]).reshape(bsz, 1, 1)
        return wr, br

    # Case 1: small aligned batch (single block).
    batch = 8
    states = jax.random.normal(k_states, (batch, num_agent, num_state), jnp.float32)
    w, b = mixnet_forward(states, prepped)
    w = jax.block_until_ready(w)
    b = jax.block_until_ready(b)
    w_ref, b_ref = ref_forward(states)
    assert w.shape == (batch, num_agent, 1) and b.shape == (batch, 1, 1)
    assert jnp.allclose(w, w_ref, atol=1e-5), "w mismatch vs reference (batch=8)"
    assert jnp.allclose(b, b_ref, atol=1e-5), "b mismatch vs reference (batch=8)"

    # Case 2: ragged batch — exercises the partial last block / masked edge
    # stores without any wrapper-side padding of x.
    batch2 = 20
    states2 = jax.random.normal(k_states2, (batch2, num_agent, num_state), jnp.float32)
    w2, b2 = mixnet_forward(states2, prepped)
    w2 = jax.block_until_ready(w2)
    b2 = jax.block_until_ready(b2)
    w2_ref, b2_ref = ref_forward(states2)
    assert jnp.allclose(w2, w2_ref, atol=1e-5), "w mismatch vs reference (batch=20)"
    assert jnp.allclose(b2, b2_ref, atol=1e-5), "b mismatch vs reference (batch=20)"

    print("KERNEL_OK")
</pallas_src>

<mosaic_0001>
module attributes {stable_mosaic.version = 11 : i64} {
  func.func @_mixnet_kernel(%arg0: i32, %arg1: memref<8x64xf32, #tpu.memory_space<vmem>>, %arg2: memref<64x128xf32, #tpu.memory_space<vmem>>, %arg3: memref<1x128xf32, #tpu.memory_space<vmem>>, %arg4: memref<128x128xf32, #tpu.memory_space<vmem>>, %arg5: memref<1x128xf32, #tpu.memory_space<vmem>>, %arg6: memref<8x5xf32, #tpu.memory_space<vmem>>) attributes {dimension_semantics = [#tpu.dimension_semantics<parallel>], iteration_bounds = array<i64: 1>, scalar_prefetch = 0 : i64, scratch_operands = 0 : i64, tpu.core_type = #tpu.core_type<tc>, window_params = [{transform_indices = @transform_0, window_bounds = array<i64: 8, 64>}, {pipeline_mode = #tpu.pipeline_mode<synchronous>, transform_indices = @transform_1, window_bounds = array<i64: 64, 128>}, {pipeline_mode = #tpu.pipeline_mode<synchronous>, transform_indices = @transform_2, window_bounds = array<i64: 1, 128>}, {pipeline_mode = #tpu.pipeline_mode<synchronous>, transform_indices = @transform_3, window_bounds = array<i64: 128, 128>}, {pipeline_mode = #tpu.pipeline_mode<synchronous>, transform_indices = @transform_4, window_bounds = array<i64: 1, 128>}, {transform_indices = @transform_5, window_bounds = array<i64: 8, 5>}]} {
    %c0 = arith.constant 0 : index
    %c0_0 = arith.constant 0 : index
    %0 = vector.load %arg1[%c0, %c0_0] : memref<8x64xf32, #tpu.memory_space<vmem>>, vector<8x64xf32>
    %c0_1 = arith.constant 0 : index
    %c0_2 = arith.constant 0 : index
    %1 = vector.load %arg2[%c0_1, %c0_2] : memref<64x128xf32, #tpu.memory_space<vmem>>, vector<64x128xf32>
    %cst = arith.constant dense<0.000000e+00> : vector<8x128xf32>
    %2 = tpu.matmul %0, %1, %cst {dimension_numbers = #tpu.dot_dimension_numbers<[1], [0], [0], [1], [0, 0, 1, 1], [], []>} : vector<8x64xf32>, vector<64x128xf32>, vector<8x128xf32> -> vector<8x128xf32>
    %c0_3 = arith.constant 0 : index
    %c0_4 = arith.constant 0 : index
    %3 = vector.load %arg3[%c0_3, %c0_4] : memref<1x128xf32, #tpu.memory_space<vmem>>, vector<1x128xf32>
    %4 = vector.broadcast %3 : vector<1x128xf32> to vector<8x128xf32>
    %5 = arith.addf %2, %4 : vector<8x128xf32>
    %cst_5 = arith.constant 0.000000e+00 : f32
    %6 = vector.broadcast %cst_5 : f32 to vector<8x128xf32>
    %7 = arith.maximumf %5, %6 : vector<8x128xf32>
    %c0_6 = arith.constant 0 : index
    %c0_7 = arith.constant 0 : index
    %8 = vector.load %arg4[%c0_6, %c0_7] : memref<128x128xf32, #tpu.memory_space<vmem>>, vector<128x128xf32>
    %cst_8 = arith.constant dense<0.000000e+00> : vector<8x128xf32>
    %9 = tpu.matmul %7, %8, %cst_8 {dimension_numbers = #tpu.dot_dimension_numbers<[1], [0], [0], [1], [0, 0, 1, 1], [], []>} : vector<8x128xf32>, vector<128x128xf32>, vector<8x128xf32> -> vector<8x128xf32>
    %c0_9 = arith.constant 0 : index
    %c0_10 = arith.constant 0 : index
    %10 = vector.load %arg5[%c0_9, %c0_10] : memref<1x128xf32, #tpu.memory_space<vmem>>, vector<1x128xf32>
    %11 = vector.broadcast %10 : vector<1x128xf32> to vector<8x128xf32>
    %12 = arith.addf %9, %11 : vector<8x128xf32>
    %13 = tpu.iota {dimensions = array<i32: 1>} : vector<8x128xi32>
    %c4_i32 = arith.constant 4 : i32
    %14 = vector.broadcast %c4_i32 : i32 to vector<8x128xi32>
    %15 = arith.cmpi slt, %13, %14 : vector<8x128xi32>
    %16 = math.absf %12 : vector<8x128xf32>
    %17 = arith.select %15, %16, %12 : vector<8x128xi1>, vector<8x128xf32>
    %18 = vector.extract_strided_slice %17 {offsets = [0, 0], sizes = [8, 5], strides = [1, 1]} : vector<8x128xf32> to vector<8x5xf32>
    %c0_11 = arith.constant 0 : index
    %c0_12 = arith.constant 0 : index
    %19 = vector.load %arg6[%c0_11, %c0_12] : memref<8x5xf32, #tpu.memory_space<vmem>>, vector<8x5xf32>
    tpu.vector_store %arg6[%c0_11, %c0_12], %18 {strides = array<i32>} : memref<8x5xf32, #tpu.memory_space<vmem>>, vector<8x5xf32>,
    return
  }
  func.func @transform_0(%arg0: i32) -> (i32, i32) {
    %c0_i32 = arith.constant 0 : i32
    %c0_i32_0 = arith.constant 0 : i32
    return %arg0, %c0_i32 : i32, i32
  }
  func.func @transform_1(%arg0: i32) -> (i32, i32) {
    %c0_i32 = arith.constant 0 : i32
    %c0_i32_0 = arith.constant 0 : i32
    %c0_i32_1 = arith.constant 0 : i32
    return %c0_i32, %c0_i32_0 : i32, i32
  }
  func.func @transform_2(%arg0: i32) -> (i32, i32) {
    %c0_i32 = arith.constant 0 : i32
    %c0_i32_0 = arith.constant 0 : i32
    %c0_i32_1 = arith.constant 0 : i32
    return %c0_i32, %c0_i32_0 : i32, i32
  }
  func.func @transform_3(%arg0: i32) -> (i32, i32) {
    %c0_i32 = arith.constant 0 : i32
    %c0_i32_0 = arith.constant 0 : i32
    %c0_i32_1 = arith.constant 0 : i32
    return %c0_i32, %c0_i32_0 : i32, i32
  }
  func.func @transform_4(%arg0: i32) -> (i32, i32) {
    %c0_i32 = arith.constant 0 : i32
    %c0_i32_0 = arith.constant 0 : i32
    %c0_i32_1 = arith.constant 0 : i32
    return %c0_i32, %c0_i32_0 : i32, i32
  }
  func.func @transform_5(%arg0: i32) -> (i32, i32) {
    %c0_i32 = arith.constant 0 : i32
    %c0_i32_0 = arith.constant 0 : i32
    return %arg0, %c0_i32 : i32, i32
  }
}

</mosaic_0001>

<bundles_post_ra>
// kernel: tpu_custom_call.1
= control target key start
LH: loop header
LB: loop body
LE: loop exit
PB: predicated region body
PF: predicated region fallthrough
CT: control target
= control target key end

     0   :  { %10 = vsyncpa [#allocation3], 0  ;;  %s588_s0 = inlined_call_operand.hbm [shape: f32[8,64], index: 0, kind: input, shape index: {}]   ;;  %s589_s1 = inlined_call_operand.hbm [shape: f32[64,128], index: 1, kind: input, shape index: {}]   ;;  %s590_s2 = inlined_call_operand.vmem [shape: f32[1,128], index: 2, kind: input, shape index: {}]   ;;  %s591_s3 = inlined_call_operand.hbm [shape: f32[128,128], index: 3, kind: input, shape index: {}]   ;;  %s592_s4 = inlined_call_operand.vmem [shape: f32[1,128], index: 4, kind: input, shape index: {}]   ;;  %s593_s5 = inlined_call_operand.hbm [shape: f32[8,5], index: 5, kind: output, shape index: {}]  }
   0x1   :  { %11 = vsyncpa [#allocation6], 0 }
   0x2   :  { %12 = vsyncpa [#allocation4], 0  ;;  %s489_s18 = smov [#allocation5]   ;;  %s395_s22 = scalar_lea.hbm %s589_s1, 1024 }
   0x3   :  { %s28_s19 = sshll.u32 %s489_s18, 4  ;;  %p396_p0 = scmp.ne.s32.totalorder %s589_s1, %s395_s22  ;;  %s29_s19 = int_to_ptr.vmem [resolvable:$true] %s28_s19 }
   0x4   :  { %p399_p1 = scmp.lt.u32.totalorder %s395_s22, %s589_s1 }
   0x6   :  { %p401_p2 = pnand %p399_p1, %p396_p0 }
   0x8   :  { %404 = shalt.err (!%p401_p2)
}
   0x9   :  { %s405_s27 = scalar_lea.vmem %s29_s19, 1024  ;;  %p410_p4 = scmp.lt.s32.totalorder %s29_s19, %s29_s19 }
   0xa   :  { %p406_p3 = scmp.ne.s32.totalorder %s29_s19, %s405_s27  ;;  %p411_p5 = scmp.lt.s32.totalorder %s405_s27, %s405_s27 }
   0xc   :  { %p412_p6 = por %p411_p5, %p410_p4 }
   0xe   :  { %p413_p7 = pnand %p412_p6, %p406_p3 }
  0x10   :  { %416 = shalt.err (!%p413_p7)
}
  0x11   :  { %s490_s28 = smov 128   ;;  %s491_s29 = smov 8  }
  0x12   :  { %34 = dma.hbm_to_vmem [thread:$0]  %s589_s1, 1024, %s29_s19, [#allocation6], %s490_s28, %s490_s28, %s491_s29  }
  0x13   :  { %s492_s7 = smov [#allocation2]   ;;  %s493_s9 = smov [#allocation7]  }
  0x14   :  { %s19_s8 = sshll.u32 %s492_s7, 4  ;;  %s42_s10 = sshll.u32 %s493_s9, 4  ;;  %s20_s8 = int_to_ptr.vmem [resolvable:$true] %s19_s8  ;;  %s43_s10 = int_to_ptr.vmem [resolvable:$true] %s42_s10 }
  0x15   :  { %s417_s13 = scalar_lea.hbm %s588_s0, 128 }
  0x16   :  { %p418_p8 = scmp.ne.s32.totalorder %s588_s0, %s417_s13  ;;  %p421_p9 = scmp.lt.u32.totalorder %s417_s13, %s588_s0 }
  0x18   :  { %p423_p10 = pnand %p421_p9, %p418_p8 }
  0x1a   :  { %426 = shalt.err (!%p423_p10)
}
  0x1b   :  { %s427_s1 = scalar_lea.vmem %s20_s8, 128  ;;  %p432_p12 = scmp.lt.s32.totalorder %s20_s8, %s20_s8 }
  0x1c   :  { %p428_p11 = scmp.ne.s32.totalorder %s20_s8, %s427_s1  ;;  %p433_p13 = scmp.lt.s32.totalorder %s427_s1, %s427_s1 }
  0x1e   :  { %p434_p0 = por %p433_p13, %p432_p12 }
  0x20   :  { %p435_p1 = pnand %p434_p0, %p428_p11 }
  0x22   :  { %438 = shalt.err (!%p435_p1)
}
  0x23   :  { %22 = dma.hbm_to_vmem [thread:$0]  %s588_s0, 128, %s20_s8, [#allocation3]  }
  0x24   :  { %s439_s22 = scalar_lea.hbm %s591_s3, 2048 }
  0x25   :  { %p440_p2 = scmp.ne.s32.totalorder %s591_s3, %s439_s22  ;;  %p443_p3 = scmp.lt.u32.totalorder %s439_s22, %s591_s3 }
  0x27   :  { %p445_p4 = pnand %p443_p3, %p440_p2 }
  0x29   :  { %448 = shalt.err (!%p445_p4)
}
  0x2a   :  { %s449_s27 = scalar_lea.vmem %s43_s10, 2048  ;;  %p454_p6 = scmp.lt.s32.totalorder %s43_s10, %s43_s10 }
  0x2b   :  { %p450_p5 = scmp.ne.s32.totalorder %s43_s10, %s449_s27  ;;  %p455_p7 = scmp.lt.s32.totalorder %s449_s27, %s449_s27 }
  0x2d   :  { %p456_p8 = por %p455_p7, %p454_p6 }
  0x2f   :  { %p457_p9 = pnand %p456_p8, %p450_p5 }
  0x31   :  { %460 = shalt.err (!%p457_p9)
}
  0x32   :  { %48 = dma.hbm_to_vmem [thread:$0]  %s591_s3, 2048, %s43_s10, [#allocation6], %s490_s28, %s490_s28, %s491_s29  }
  0x33   :  { %483 = dma.done.wait [#allocation3], 128  }
  0x34   :  { %484 = vsyncadd [#allocation3], 4294967168 }
  0x35   :  { %485 = dma.done.wait [#allocation6], 3072  }
  0x36   :  { %486 = vsyncadd [#allocation6], 4294964224  ;;  %v494_v0 = vmov 0.0|0.0   ;;  %vm495_vm0 = vmmov 0   ;;  %v496_v1 = vmov 0.0   ;;  %v61_v2 = vld [vmem:[#allocation5] sm:$0xff]  ;;  %v244_v44 = vlaneseq }
  0x37   :  { %350 = vmatprep.subr.bf16.mxu0 %v494_v0  ;;  %312 = vmatprep.mubr.msk.f32.mxu0 %vm495_vm0, %v496_v1  ;;  %v62_v3 = vld [vmem:[#allocation5 + $0x8] sm:$0xff]  ;;  %v63_v4 = vld [vmem:[#allocation5 + $0x10] sm:$0xff]  ;;  %v64_v6 = vld [vmem:[#allocation5 + $0x18] sm:$0xff]  ;;  %vm76_vm1 = vcmask 523264   ;;  %s497_s7 = smov [#allocation8]   ;;  %vm249_vm3 = vcmask 39936  }
  0x38   :  { %362 = vmatprep.subr.bf16.mxu1 %v494_v0  ;;  %347 = vmatprep.mubr.msk.f32.mxu1 %vm495_vm0, %v496_v1  ;;  %v351_v5 = vpack.c.bf16 %v62_v3, %v61_v2  ;;  %v354_v7 = vpack.c.bf16 %v64_v6, %v63_v4  ;;  %v151_v8 = vld [vmem:[#allocation7] sm:$0xff]  ;;  %v152_v9 = vld [vmem:[#allocation7 + $0x8] sm:$0xff]  ;;  %v153_v10 = vld [vmem:[#allocation7 + $0x10] sm:$0xff]  ;;  %v245_v46 = vand.u32 127, %v244_v44  ;;  %s257_s8 = sshll.u32 %s497_s7, 4  ;;  %s258_s8 = int_to_ptr.vmem [resolvable:$true] %s257_s8 }
  0x39   :  { %v65_v11 = vld [vmem:[#allocation5 + $0x20] sm:$0xff]  ;;  %v66_v12 = vld [vmem:[#allocation5 + $0x28] sm:$0xff]  ;;  %v363_v13 = vpack.c.bf16 %v152_v9, %v151_v8  ;;  %v154_v14 = vld [vmem:[#allocation7 + $0x18] sm:$0xff]  ;;  %p466_p11 = scmp.lt.s32.totalorder %s258_s8, %s258_s8 }
  0x3a   :  { %352 = vmatpush3.bf16.msra.mxu0 %v351_v5  ;;  %v366_v15 = vpack.c.bf16 %v154_v14, %v153_v10  ;;  %v357_v16 = vpack.c.bf16 %v66_v12, %v65_v11  ;;  %v155_v17 = vld [vmem:[#allocation7 + $0x20] sm:$0xff]  ;;  %v156_v18 = vld [vmem:[#allocation7 + $0x28] sm:$0xff]  ;;  %v67_v19 = vld [vmem:[#allocation5 + $0x30] sm:$0xff]  ;;  %vm246_vm2 = vcmp.lt.s32.totalorder %v245_v46, 4 }
  0x3b   :  { %353 = vmatprep.subr.bf16.mxu0 %v494_v0  ;;  %364 = vmatpush3.bf16.msra.mxu1 %v363_v13  ;;  %v68_v20 = vld [vmem:[#allocation5 + $0x38] sm:$0xff]  ;;  %v369_v21 = vpack.c.bf16 %v156_v18, %v155_v17  ;;  %v157_v23 = vld [vmem:[#allocation7 + $0x30] sm:$0xff]  ;;  %v159_v27 = vld [vmem:[#allocation7 + $0x40] sm:$0xff] }
  0x3c   :  { %365 = vmatprep.subr.bf16.mxu1 %v494_v0  ;;  %v360_v22 = vpack.c.bf16 %v68_v20, %v67_v19  ;;  %v158_v24 = vld [vmem:[#allocation7 + $0x38] sm:$0xff]  ;;  %v160_v28 = vld [vmem:[#allocation7 + $0x48] sm:$0xff]  ;;  %v161_v30 = vld [vmem:[#allocation7 + $0x50] sm:$0xff] }
  0x3d   :  { %v372_v25 = vpack.c.bf16 %v158_v24, %v157_v23  ;;  %v60_v26 = vld [vmem:[#allocation2] sm:$0xff]  ;;  %v375_v29 = vpack.c.bf16 %v160_v28, %v159_v27  ;;  %v163_v33 = vld [vmem:[#allocation7 + $0x60] sm:$0xff]  ;;  %v164_v34 = vld [vmem:[#allocation7 + $0x68] sm:$0xff] }
  0x3e   :  { %355 = vmatpush3.bf16.msra.mxu0 %v354_v7  ;;  %v162_v31 = vld [vmem:[#allocation7 + $0x58] sm:$0xff]  ;;  %v381_v35 = vpack.c.bf16 %v164_v34, %v163_v33  ;;  %v165_v36 = vld [vmem:[#allocation7 + $0x70] sm:$0xff] }
  0x3f   :  { %356 = vmatprep.subr.bf16.mxu0 %v494_v0  ;;  %367 = vmatpush3.bf16.msra.mxu1 %v366_v15  ;;  %v378_v32 = vpack.c.bf16 %v162_v31, %v161_v30  ;;  %v166_v37 = vld [vmem:[#allocation7 + $0x78] sm:$0xff] }
  0x40   :  { %368 = vmatprep.subr.bf16.mxu1 %v494_v0  ;;  %v384_v38 = vpack.c.bf16 %v166_v37, %v165_v36  ;;  %v267_v39 = vld [vmem:[%s590_s2] ss:$0 sm:$0xff]  ;;  %s461_s2 = scalar_lea.vmem %s258_s8, 128 }
  0x41   :  { %v269_v45 = vld [vmem:[%s592_s4] ss:$0 sm:$0xff]  ;;  %p462_p10 = scmp.ne.s32.totalorder %s258_s8, %s461_s2  ;;  %p467_p12 = scmp.lt.s32.totalorder %s461_s2, %s461_s2 }
  0x42   :  { %358 = vmatpush3.bf16.msra.mxu0 %v357_v16 }
  0x43   :  { %359 = vmatprep.subr.bf16.mxu0 %v494_v0  ;;  %370 = vmatpush3.bf16.msra.mxu1 %v369_v21  ;;  %p468_p13 = por %p467_p12, %p466_p11 }
  0x44   :  { %371 = vmatprep.subr.bf16.mxu1 %v494_v0 }
  0x45   :  { %p469_p0 = pnand %p468_p13, %p462_p10 }
  0x46   :  { %361 = vmatpush3.bf16.msra.mxu0 %v360_v22 }
  0x47   :  { %373 = vmatpush3.bf16.msra.mxu1 %v372_v25 }
  0x48   :  { %374 = vmatprep.subr.bf16.mxu1 %v494_v0 }
  0x49   :  { %313 = vmatmul.mubr.msk.f32.vlgmr.msra.gmra.mrb[0].mxu0 %vm76_vm1, %v60_v26 }
  0x4b   :  { %376 = vmatpush3.bf16.msra.mxu1 %v375_v29 }
  0x4c   :  { %377 = vmatprep.subr.bf16.mxu1 %v494_v0 }
  0x4f   :  { %379 = vmatpush3.bf16.msra.mxu1 %v378_v32 }
  0x50   :  { %380 = vmatprep.subr.bf16.mxu1 %v494_v0 }
  0x53   :  { %382 = vmatpush3.bf16.msra.mxu1 %v381_v35 }
  0x54   :  { %383 = vmatprep.subr.bf16.mxu1 %v494_v0 }
  0x57   :  { %385 = vmatpush3.bf16.msra.mxu1 %v384_v38 }
 0x11c   :  { %v146_v40 = vpop.f32.mrb[0].mxu0 }
 0x11d   :  { %v147_v41 = vadd.f32 %v267_v39, %v146_v40  ;;  %v314_v42 = vpop.f32.mrb[1].mxu0 }
 0x11f   :  { %v150_v43 = vmax.f32 %v147_v41, 0.0 }
 0x121   :  { %348 = vmatmul.mubr.f32.vlgmr.msra.gmra.mrb[0].mxu1 %v150_v43 }
 0x1f4   :  { %v240_v47 = vpop.f32.mrb[0].mxu1 }
 0x1f5   :  { %v241_v48 = vadd.f32 %v269_v45, %v240_v47  ;;  %v349_v49 = vpop.f32.mrb[1].mxu1 }
 0x1f7   :  { %v247_v50 = vand.u32 2147483647, %v241_v48 }
 0x1f9   :  { %v248_v51 = vsel %vm246_vm2, %v247_v50, %v241_v48 }
 0x1fa   :  { %250 = vst.msk [vmem:[#allocation8] sm:$0xff] %vm249_vm3, %v248_v51 }
 0x1fb   :  { %472 = shalt.err (!%p469_p0)
}
 0x1fc   :  { %s473_s10 = scalar_lea.hbm %s593_s5, 128 }
 0x1fd   :  { %p474_p1 = scmp.ne.s32.totalorder %s593_s5, %s473_s10  ;;  %p477_p2 = scmp.lt.u32.totalorder %s473_s10, %s593_s5 }
 0x1ff   :  { %p479_p3 = pnand %p477_p2, %p474_p1 }
 0x201   :  { %482 = shalt.err (!%p479_p3)
}
 0x202   :  { %260 = dma.vmem_to_hbm [thread:$0]  %s258_s8, 128, %s593_s5, [#allocation4]  }
 0x203   :  { %487 = dma.done.wait [#allocation4], 128  }
 0x204   :  { %488 = vsyncadd [#allocation4], 4294967168 }
 0x205   :  { %264 = vsyncpa [#allocation3], 1 }
 0x206   :  { %265 = vsyncpa [#allocation6], 1 }
 0x207   :  { %266 = vsyncpa [#allocation4], 1 }

</bundles_post_ra>
